<compile_context>
chip_gen: v6e
topology: v6e:2x2x1
jax: 0.10.0
libtpu: 0.0.40
codegen_flags: <defaults>
</compile_context>

<pallas_src>
import functools

import jax
import jax.numpy as jnp
from jax.experimental import pallas as pl
from jax.experimental.pallas import tpu as pltpu


def _round_up(x, m):
    return ((x + m - 1) // m) * m


_LANE = 128                          # lane width: weight out-dims padded to this
_TB_MAX = 1024                       # max rows per activation tile
_ACT_VMEM_BUDGET = 12 * 1024 * 1024  # activation working-set budget (bytes)
_VMEM_LIMIT = 32 * 1024 * 1024       # explicit scoped-VMEM limit (v5e default = 16 MiB)

# Grid-invariant operands (weights/biases) only need a single VMEM buffer.
_INVARIANT = {"pipeline_mode": pl.Buffered(1)} if hasattr(pl, "Buffered") else {}


def _mlp_kernel(x_ref, w1_ref, b1_ref, w2_ref, b2_ref, o_ref):
    """Fused Linear -> ReLU -> Linear on one batch tile.

    x_ref : [TB, D_in]         activation tile (native dtype), streamed over grid
    w1_ref: [D_in, D_hid_p]    bf16, pre-transposed & lane-padded, VMEM-resident
    b1_ref: [1, D_hid_p]       f32
    w2_ref: [D_hid_p, D_out_p] bf16
    b2_ref: [1, D_out_p]       f32
    o_ref : [TB, D_out_p]
    """
    x = x_ref[...].astype(jnp.bfloat16)           # cast in-regs: MXU sees bf16
    h = jnp.dot(x, w1_ref[...],
                preferred_element_type=jnp.float32) + b1_ref[...]
    h = jnp.maximum(h, 0.0)                       # ReLU on the VPU (f32)
    # TODO(synk): if d_hid_p grows >= ~1K, chunk the hidden dim here
    # (lax.fori_loop + f32 VMEM accumulator) instead of materializing full h.
    y = jnp.dot(h.astype(jnp.bfloat16), w2_ref[...],
                preferred_element_type=jnp.float32) + b2_ref[...]
    o_ref[...] = y.astype(o_ref.dtype)


def _pick_block_batch(batch, d_in, d_hid_p, d_out_p, in_itemsize):
    """Static (trace-time) batch-tile selection."""
    if batch <= 8:
        return max(int(batch), 1)                 # full-dim block is always legal
    # Per-row activation working set: double-buffered x & out tiles plus the
    # f32 intermediate h (and its bf16 copy).
    per_row = 2 * d_in * in_itemsize + 2 * d_out_p * 4 + d_hid_p * (4 + 2)
    cap = max(8, (_ACT_VMEM_BUDGET // per_row) // 8 * 8)
    # Aim for >= 2 grid steps so ("parallel",) shards across both v7x TensorCores.
    tb = _round_up(-(-batch // 2), 8)
    return int(min(_TB_MAX, cap, tb))


def _mlp_pallas(x, w1_t, b1_p, w2_t, b2_p, *, block_batch):
    """pallas_call over a 1-D batch grid (ragged edge block handled by Pallas)."""
    batch, d_in = x.shape
    d_hid_p = w1_t.shape[1]
    d_out_p = w2_t.shape[1]
    grid = (pl.cdiv(batch, block_batch),)

    in_bytes = jnp.dtype(x.dtype).itemsize
    cost = pl.CostEstimate(
        flops=2 * batch * (d_in * d_hid_p + d_hid_p * d_out_p),
        transcendentals=0,
        bytes_accessed=(x.size * in_bytes
                        + w1_t.size * 2 + w2_t.size * 2          # bf16 weights
                        + (b1_p.size + b2_p.size) * 4            # f32 biases
                        + batch * d_out_p * in_bytes),            # output
    )

    return pl.pallas_call(
        _mlp_kernel,
        out_shape=jax.ShapeDtypeStruct((batch, d_out_p), x.dtype),
        grid_spec=pl.GridSpec(
            grid=grid,
            in_specs=[
                # Activations: tiled over batch, auto double-buffered.
                pl.BlockSpec((block_batch, d_in), lambda i: (i, 0)),
                # Weights / biases: constant index_map + single buffer
                # -> fetched once, VMEM-resident across all grid steps.
                pl.BlockSpec((d_in, d_hid_p), lambda i: (0, 0), **_INVARIANT),
                pl.BlockSpec((1, d_hid_p), lambda i: (0, 0), **_INVARIANT),
                pl.BlockSpec((d_hid_p, d_out_p), lambda i: (0, 0), **_INVARIANT),
                pl.BlockSpec((1, d_out_p), lambda i: (0, 0), **_INVARIANT),
            ],
            out_specs=pl.BlockSpec((block_batch, d_out_p), lambda i: (i, 0)),
        ),
        compiler_params=pltpu.CompilerParams(
            dimension_semantics=("parallel",),
            vmem_limit_bytes=_VMEM_LIMIT,
        ),
        cost_estimate=cost,
    )(x, w1_t, b1_p, w2_t, b2_p)


@functools.partial(jax.jit, static_argnames=("d_out",))
def mlp_forward(x, w1_t, b1_p, w2_t, b2_p, *, d_out):
    """Jitted wrapper: pick the batch tile from static shapes, run the Pallas
    kernel on the unpadded batch, slice off padded output lanes if needed."""
    batch, d_in = x.shape
    d_hid_p = w1_t.shape[1]
    d_out_p = w2_t.shape[1]
    block_batch = _pick_block_batch(batch, d_in, d_hid_p, d_out_p,
                                    jnp.dtype(x.dtype).itemsize)
    y = _mlp_pallas(x, w1_t, b1_p, w2_t, b2_p, block_batch=block_batch)
    return y[:, :d_out] if d_out_p != d_out else y


class PallasModel:
    """JAX analogue of the PyTorch `Model` wrapper.

    - builds the inner model from `config_model['model_hyperparameters']`
    - `load_model_weights` / `freeze_layers` are forward-pass no-ops here
      (no checkpoint is loaded; parameters are initialized deterministically).
    """

    def __init__(self, config_model):
        self.config_model = config_model
        hp = config_model["model_hyperparameters"]
        d_in, d_hid, d_out = (hp["in_features"], hp["hidden_features"],
                              hp["out_features"])
        self.d_in, self.d_hid, self.d_out = d_in, d_hid, d_out

        key = jax.random.PRNGKey(0)
        k1, k2, k3, k4 = jax.random.split(key, 4)
        # PyTorch nn.Linear convention for the logical params: weight [out, in].
        scale1 = 1.0 / jnp.sqrt(d_in)
        scale2 = 1.0 / jnp.sqrt(d_hid)
        self.w1 = jax.random.uniform(k1, (d_hid, d_in), jnp.float32, -scale1, scale1)
        self.b1 = jax.random.uniform(k2, (1, d_hid), jnp.float32, -scale1, scale1)
        self.w2 = jax.random.uniform(k3, (d_out, d_hid), jnp.float32, -scale2, scale2)
        self.b2 = jax.random.uniform(k4, (1, d_out), jnp.float32, -scale2, scale2)

        # One-time prep: transpose to [in, out], lane-pad only the weight
        # output dims (d_in stays natural so x isn't over-fetched), cast the
        # matmul operands to bf16; biases stay f32 and are added post-dot.
        d_hid_p = _round_up(d_hid, _LANE)
        d_out_p = _round_up(d_out, _LANE)
        self.w1_t = jnp.zeros((d_in, d_hid_p), jnp.bfloat16
                              ).at[:, :d_hid].set(self.w1.T.astype(jnp.bfloat16))
        self.b1_p = jnp.zeros((1, d_hid_p), jnp.float32).at[:, :d_hid].set(self.b1)
        self.w2_t = jnp.zeros((d_hid_p, d_out_p), jnp.bfloat16
                              ).at[:d_hid, :d_out].set(self.w2.T.astype(jnp.bfloat16))
        self.b2_p = jnp.zeros((1, d_out_p), jnp.float32).at[:, :d_out].set(self.b2)
        (self.w1_t, self.b1_p, self.w2_t, self.b2_p) = jax.block_until_ready(
            (self.w1_t, self.b1_p, self.w2_t, self.b2_p))

        self.load_model_weights(config_model.get("weights_path"))
        self.freeze_layers(config_model.get("freeze_layers", []))
        print("done loading model")

    def load_model_weights(self, weights_path):
        # TODO(synk): checkpoint loading (torch.load of a state_dict) has no
        # in-kernel equivalent; parameters are synthesized deterministically.
        pass

    def freeze_layers(self, freeze_layers):
        # requires_grad bookkeeping does not affect the forward pass; no-op.
        pass

    def __call__(self, x):
        return mlp_forward(x, self.w1_t, self.b1_p, self.w2_t, self.b2_p,
                           d_out=self.d_out)


def _reference(x, w1, b1, w2, b2):
    h = jnp.maximum(x @ w1.T + b1, 0.0)
    return h @ w2.T + b2


if __name__ == "__main__":
    config_model = {
        "model_hyperparameters": {
            "in_features": 32,
            "hidden_features": 64,
            "out_features": 16,
        },
        "weights_path": None,
        "freeze_layers": [],
    }
    model = PallasModel(config_model)

    k0, k1 = jax.random.split(jax.random.PRNGKey(0))
    x = jax.random.normal(k0, (8, 32), jnp.float32)

    out = jax.block_until_ready(model(x))
    ref = _reference(x, model.w1, model.b1, model.w2, model.b2)
    assert out.shape == (8, 16), out.shape
    # bf16 MXU operands with f32 accumulation: tolerance relaxed deliberately.
    assert jnp.allclose(out, ref, atol=5e-2, rtol=5e-2), \
        float(jnp.max(jnp.abs(out - ref)))

    # Ragged batch (not a multiple of the tile): exercises the masked edge block.
    x2 = jax.random.normal(k1, (13, 32), jnp.float32)
    out2 = jax.block_until_ready(model(x2))
    ref2 = _reference(x2, model.w1, model.b1, model.w2, model.b2)
    assert out2.shape == (13, 16), out2.shape
    assert jnp.allclose(out2, ref2, atol=5e-2, rtol=5e-2), \
        float(jnp.max(jnp.abs(out2 - ref2)))

    print("KERNEL_OK")
</pallas_src>

<mosaic_0001>
module attributes {stable_mosaic.version = 11 : i64} {
  func.func @_mlp_kernel(%arg0: i32, %arg1: memref<8x32xf32, #tpu.memory_space<vmem>>, %arg2: memref<32x128xbf16, #tpu.memory_space<vmem>>, %arg3: memref<1x128xf32, #tpu.memory_space<vmem>>, %arg4: memref<128x128xbf16, #tpu.memory_space<vmem>>, %arg5: memref<1x128xf32, #tpu.memory_space<vmem>>, %arg6: memref<8x128xf32, #tpu.memory_space<vmem>>) attributes {dimension_semantics = [#tpu.dimension_semantics<parallel>], iteration_bounds = array<i64: 1>, scalar_prefetch = 0 : i64, scratch_operands = 0 : i64, tpu.core_type = #tpu.core_type<tc>, window_params = [{transform_indices = @transform_0, window_bounds = array<i64: 8, 32>}, {pipeline_mode = #tpu.pipeline_mode<synchronous>, transform_indices = @transform_1, window_bounds = array<i64: 32, 128>}, {pipeline_mode = #tpu.pipeline_mode<synchronous>, transform_indices = @transform_2, window_bounds = array<i64: 1, 128>}, {pipeline_mode = #tpu.pipeline_mode<synchronous>, transform_indices = @transform_3, window_bounds = array<i64: 128, 128>}, {pipeline_mode = #tpu.pipeline_mode<synchronous>, transform_indices = @transform_4, window_bounds = array<i64: 1, 128>}, {transform_indices = @transform_5, window_bounds = array<i64: 8, 128>}]} {
    %c0 = arith.constant 0 : index
    %c0_0 = arith.constant 0 : index
    %0 = vector.load %arg1[%c0, %c0_0] : memref<8x32xf32, #tpu.memory_space<vmem>>, vector<8x32xf32>
    %1 = arith.truncf %0 : vector<8x32xf32> to vector<8x32xbf16>
    %c0_1 = arith.constant 0 : index
    %c0_2 = arith.constant 0 : index
    %2 = vector.load %arg2[%c0_1, %c0_2] : memref<32x128xbf16, #tpu.memory_space<vmem>>, vector<32x128xbf16>
    %cst = arith.constant dense<0.000000e+00> : vector<8x128xf32>
    %3 = tpu.matmul %1, %2, %cst {dimension_numbers = #tpu.dot_dimension_numbers<[1], [0], [0], [1], [0, 0, 1, 1], [], []>} : vector<8x32xbf16>, vector<32x128xbf16>, vector<8x128xf32> -> vector<8x128xf32>
    %c0_3 = arith.constant 0 : index
    %c0_4 = arith.constant 0 : index
    %4 = vector.load %arg3[%c0_3, %c0_4] : memref<1x128xf32, #tpu.memory_space<vmem>>, vector<1x128xf32>
    %5 = vector.broadcast %4 : vector<1x128xf32> to vector<8x128xf32>
    %6 = arith.addf %3, %5 : vector<8x128xf32>
    %cst_5 = arith.constant 0.000000e+00 : f32
    %7 = vector.broadcast %cst_5 : f32 to vector<8x128xf32>
    %8 = arith.maximumf %6, %7 : vector<8x128xf32>
    %9 = arith.truncf %8 : vector<8x128xf32> to vector<8x128xbf16>
    %c0_6 = arith.constant 0 : index
    %c0_7 = arith.constant 0 : index
    %10 = vector.load %arg4[%c0_6, %c0_7] : memref<128x128xbf16, #tpu.memory_space<vmem>>, vector<128x128xbf16>
    %cst_8 = arith.constant dense<0.000000e+00> : vector<8x128xf32>
    %11 = tpu.matmul %9, %10, %cst_8 {dimension_numbers = #tpu.dot_dimension_numbers<[1], [0], [0], [1], [0, 0, 1, 1], [], []>} : vector<8x128xbf16>, vector<128x128xbf16>, vector<8x128xf32> -> vector<8x128xf32>
    %c0_9 = arith.constant 0 : index
    %c0_10 = arith.constant 0 : index
    %12 = vector.load %arg5[%c0_9, %c0_10] : memref<1x128xf32, #tpu.memory_space<vmem>>, vector<1x128xf32>
    %13 = vector.broadcast %12 : vector<1x128xf32> to vector<8x128xf32>
    %14 = arith.addf %11, %13 : vector<8x128xf32>
    %c0_11 = arith.constant 0 : index
    %c0_12 = arith.constant 0 : index
    %15 = vector.load %arg6[%c0_11, %c0_12] : memref<8x128xf32, #tpu.memory_space<vmem>>, vector<8x128xf32>
    tpu.vector_store %arg6[%c0_11, %c0_12], %14 {strides = array<i32>} : memref<8x128xf32, #tpu.memory_space<vmem>>, vector<8x128xf32>,
    return
  }
  func.func @transform_0(%arg0: i32) -> (i32, i32) {
    %c0_i32 = arith.constant 0 : i32
    %c0_i32_0 = arith.constant 0 : i32
    return %arg0, %c0_i32 : i32, i32
  }
  func.func @transform_1(%arg0: i32) -> (i32, i32) {
    %c0_i32 = arith.constant 0 : i32
    %c0_i32_0 = arith.constant 0 : i32
    %c0_i32_1 = arith.constant 0 : i32
    return %c0_i32, %c0_i32_0 : i32, i32
  }
  func.func @transform_2(%arg0: i32) -> (i32, i32) {
    %c0_i32 = arith.constant 0 : i32
    %c0_i32_0 = arith.constant 0 : i32
    %c0_i32_1 = arith.constant 0 : i32
    return %c0_i32, %c0_i32_0 : i32, i32
  }
  func.func @transform_3(%arg0: i32) -> (i32, i32) {
    %c0_i32 = arith.constant 0 : i32
    %c0_i32_0 = arith.constant 0 : i32
    %c0_i32_1 = arith.constant 0 : i32
    return %c0_i32, %c0_i32_0 : i32, i32
  }
  func.func @transform_4(%arg0: i32) -> (i32, i32) {
    %c0_i32 = arith.constant 0 : i32
    %c0_i32_0 = arith.constant 0 : i32
    %c0_i32_1 = arith.constant 0 : i32
    return %c0_i32, %c0_i32_0 : i32, i32
  }
  func.func @transform_5(%arg0: i32) -> (i32, i32) {
    %c0_i32 = arith.constant 0 : i32
    %c0_i32_0 = arith.constant 0 : i32
    return %arg0, %c0_i32 : i32, i32
  }
}

</mosaic_0001>

<bundles_post_ra>
// kernel: mlp_forward.1
= control target key start
LH: loop header
LB: loop body
LE: loop exit
PB: predicated region body
PF: predicated region fallthrough
CT: control target
= control target key end

     0   :  { %10 = vsyncpa [#allocation3], 0  ;;  %s473_s0 = inlined_call_operand.hbm [shape: f32[8,32], index: 0, kind: input, shape index: {}]   ;;  %s474_s1 = inlined_call_operand.hbm [shape: bf16[32,128], index: 1, kind: input, shape index: {}]   ;;  %s475_s2 = inlined_call_operand.vmem [shape: f32[1,128], index: 2, kind: input, shape index: {}]   ;;  %s476_s3 = inlined_call_operand.hbm [shape: bf16[128,128], index: 3, kind: input, shape index: {}]   ;;  %s477_s4 = inlined_call_operand.vmem [shape: f32[1,128], index: 4, kind: input, shape index: {}]   ;;  %s478_s5 = inlined_call_operand.hbm [shape: f32[8,128], index: 5, kind: output, shape index: {}]  }
   0x1   :  { %11 = vsyncpa [#allocation6], 0 }
   0x2   :  { %12 = vsyncpa [#allocation4], 0  ;;  %s417_s18 = smov [#allocation5]  }
   0x3   :  { %s28_s19 = sshll.u32 %s417_s18, 4  ;;  %s29_s19 = int_to_ptr.vmem [resolvable:$true] %s28_s19 }
   0x4   :  { %s339_s20 = scalar_lea.vmem %s29_s19, 256  ;;  %p344_p1 = scmp.lt.s32.totalorder %s29_s19, %s29_s19 }
   0x5   :  { %p340_p0 = scmp.ne.s32.totalorder %s29_s19, %s339_s20  ;;  %p345_p2 = scmp.lt.s32.totalorder %s339_s20, %s339_s20 }
   0x7   :  { %p346_p3 = por %p345_p2, %p344_p1 }
   0x9   :  { %p347_p4 = pnand %p346_p3, %p340_p0 }
   0xb   :  { %350 = shalt.err (!%p347_p4)
}
   0xc   :  { %s418_s21 = smov 64   ;;  %s419_s22 = smov 4  }
   0xd   :  { %34 = dma.hbm_to_vmem [thread:$0]  %s474_s1, 256, %s29_s19, [#allocation6], %s418_s21, %s418_s21, %s419_s22  }
   0xe   :  { %s420_s25 = smov [#allocation2]   ;;  %s421_s27 = smov [#allocation7]  }
   0xf   :  { %s19_s26 = sshll.u32 %s420_s25, 4  ;;  %s42_s28 = sshll.u32 %s421_s27, 4  ;;  %s20_s26 = int_to_ptr.vmem [resolvable:$true] %s19_s26  ;;  %s43_s28 = int_to_ptr.vmem [resolvable:$true] %s42_s28 }
  0x10   :  { %s359_s29 = scalar_lea.vmem %s20_s26, 128  ;;  %p364_p6 = scmp.lt.s32.totalorder %s20_s26, %s20_s26 }
  0x11   :  { %p360_p5 = scmp.ne.s32.totalorder %s20_s26, %s359_s29  ;;  %p365_p7 = scmp.lt.s32.totalorder %s359_s29, %s359_s29 }
  0x13   :  { %p366_p8 = por %p365_p7, %p364_p6 }
  0x15   :  { %p367_p9 = pnand %p366_p8, %p360_p5 }
  0x17   :  { %370 = shalt.err (!%p367_p9)
}
  0x18   :  { %22 = dma.hbm_to_vmem [thread:$0]  %s473_s0, 128, %s20_s26, [#allocation3]  }
  0x19   :  { %s379_s7 = scalar_lea.vmem %s43_s28, 1024  ;;  %p384_p11 = scmp.lt.s32.totalorder %s43_s28, %s43_s28 }
  0x1a   :  { %p380_p10 = scmp.ne.s32.totalorder %s43_s28, %s379_s7  ;;  %p385_p12 = scmp.lt.s32.totalorder %s379_s7, %s379_s7 }
  0x1c   :  { %p386_p13 = por %p385_p12, %p384_p11 }
  0x1e   :  { %p387_p0 = pnand %p386_p13, %p380_p10 }
  0x20   :  { %390 = shalt.err (!%p387_p0)
}
  0x21   :  { %48 = dma.hbm_to_vmem [thread:$0]  %s476_s3, 1024, %s43_s28, [#allocation6], %s418_s21, %s418_s21, %s419_s22  }
  0x22   :  { %411 = dma.done.wait [#allocation3], 128  }
  0x23   :  { %412 = vsyncadd [#allocation3], 4294967168 }
  0x24   :  { %413 = dma.done.wait [#allocation6], 1280  }
  0x25   :  { %414 = vsyncadd [#allocation6], 4294966016  ;;  %v422_v0 = vmov 0.0   ;;  %vm423_vm0 = vmmov 0   ;;  %v321_v1 = vld [vmem:[#allocation5 + $0x8] sm:$0xff]   ;;  %v322_v2 = vld [vmem:[#allocation5] sm:$0xff]  }
  0x26   :  { %285 = vmatprep.subr.bf16.mxu0 %v422_v0  ;;  %289 = vmatprep.mubr.msk.bf16.mxu0 %vm423_vm0, %v422_v0  ;;  %v61_v3 = vld [vmem:[#allocation2] sm:$0xff]  ;;  %v323_v4 = vld [vmem:[#allocation7 + $0x38] sm:$0xff]   ;;  %v324_v6 = vld [vmem:[#allocation7 + $0x30] sm:$0xff]   ;;  %vm86_vm1 = vcmask 261120   ;;  %s424_s11 = smov [#allocation8]  }
  0x27   :  { %293 = vmatprep.subr.bf16.mxu1 %v422_v0  ;;  %309 = vmatprep.mubr.msk.bf16.mxu1 %vm423_vm0, %v422_v0  ;;  %v62_v5 = vpack.c.bf16 %v61_v3, %v61_v3  ;;  %v325_v7 = vld [vmem:[#allocation7 + $0x28] sm:$0xff]   ;;  %v326_v8 = vld [vmem:[#allocation7 + $0x20] sm:$0xff]   ;;  %v327_v9 = vld [vmem:[#allocation7 + $0x18] sm:$0xff]   ;;  %s250_s12 = sshll.u32 %s424_s11, 4  ;;  %s251_s12 = int_to_ptr.vmem [resolvable:$true] %s250_s12 }
  0x28   :  { %286 = vmatpush3.bf16.msra.mxu0 %v321_v1  ;;  %294 = vmatpush3.bf16.msra.mxu1 %v323_v4  ;;  %v328_v10 = vld [vmem:[#allocation7 + $0x10] sm:$0xff]   ;;  %v329_v11 = vld [vmem:[#allocation7 + $0x8] sm:$0xff]   ;;  %v330_v12 = vld [vmem:[#allocation7] sm:$0xff]   ;;  %p396_p2 = scmp.lt.s32.totalorder %s251_s12, %s251_s12 }
  0x29   :  { %287 = vmatprep.subr.bf16.mxu0 %v422_v0  ;;  %295 = vmatprep.subr.bf16.mxu1 %v422_v0  ;;  %v260_v13 = vld [vmem:[%s475_s2] ss:$0 sm:$0xff]  ;;  %s391_s2 = scalar_lea.vmem %s251_s12, 128 }
  0x2a   :  { %v264_v21 = vld [vmem:[%s477_s4] ss:$0 sm:$0xff]  ;;  %p392_p1 = scmp.ne.s32.totalorder %s251_s12, %s391_s2  ;;  %p397_p3 = scmp.lt.s32.totalorder %s391_s2, %s391_s2 }
  0x2c   :  { %288 = vmatpush3.bf16.msra.mxu0 %v322_v2  ;;  %296 = vmatpush3.bf16.msra.mxu1 %v324_v6  ;;  %p398_p4 = por %p397_p3, %p396_p2 }
  0x2d   :  { %297 = vmatprep.subr.bf16.mxu1 %v422_v0 }
  0x2e   :  { %p399_p5 = pnand %p398_p4, %p392_p1 }
  0x2f   :  { %290 = vmatmul.mubr.msk.bf16.vlgmr.msra.gmra.mxu0 %vm86_vm1, %v62_v5 }
  0x30   :  { %298 = vmatpush3.bf16.msra.mxu1 %v325_v7 }
  0x31   :  { %299 = vmatprep.subr.bf16.mxu1 %v422_v0 }
  0x34   :  { %300 = vmatpush3.bf16.msra.mxu1 %v326_v8 }
  0x35   :  { %301 = vmatprep.subr.bf16.mxu1 %v422_v0 }
  0x38   :  { %302 = vmatpush3.bf16.msra.mxu1 %v327_v9 }
  0x39   :  { %303 = vmatprep.subr.bf16.mxu1 %v422_v0 }
  0x3c   :  { %304 = vmatpush3.bf16.msra.mxu1 %v328_v10 }
  0x3d   :  { %305 = vmatprep.subr.bf16.mxu1 %v422_v0 }
  0x40   :  { %306 = vmatpush3.bf16.msra.mxu1 %v329_v11 }
  0x41   :  { %307 = vmatprep.subr.bf16.mxu1 %v422_v0 }
  0x44   :  { %308 = vmatpush3.bf16.msra.mxu1 %v330_v12 }
  0xef   :  { %v124_v14 = vpop.f32.mrf.mxu0 }
  0xf0   :  { %v125_v15 = vadd.f32 %v260_v13, %v124_v14 }
  0xf1   :  { %v291_v16 = vpop.f32.mrf.mxu0 }
  0xf2   :  { %v130_v17 = vmax.f32 %v125_v15, 0.0 }
  0xf3   :  { %v127_v18 = vpop.f32.mrf.mxu0 }
  0xf4   :  { %v131_v19 = vpack.c.bf16 %v130_v17, %v130_v17 }
  0xf5   :  { %v292_v20 = vpop.f32.mrf.mxu0 }
  0xf6   :  { %310 = vmatmul.mubr.bf16.vlgmr.msra.gmra.mxu1 %v131_v19 }
 0x1b6   :  { %v237_v22 = vpop.f32.mrf.mxu1 }
 0x1b7   :  { %v238_v23 = vadd.f32 %v264_v21, %v237_v22 }
 0x1b8   :  { %v311_v24 = vpop.f32.mrf.mxu1 }
 0x1b9   :  { %243 = vst [vmem:[#allocation8] sm:$0xff] %v238_v23 }
 0x1ba   :  { %v240_v25 = vpop.f32.mrf.mxu1 }
 0x1bb   :  { %402 = shalt.err (!%p399_p5)
}
 0x1bc   :  { %253 = dma.vmem_to_hbm [thread:$0]  %s251_s12, 128, %s478_s5, [#allocation4]   ;;  %v312_v26 = vpop.f32.mrf.mxu1 }
 0x1bd   :  { %415 = dma.done.wait [#allocation4], 128  }
 0x1be   :  { %416 = vsyncadd [#allocation4], 4294967168 }
 0x1bf   :  { %257 = vsyncpa [#allocation3], 1 }
 0x1c0   :  { %258 = vsyncpa [#allocation6], 1 }
 0x1c1   :  { %259 = vsyncpa [#allocation4], 1 }

</bundles_post_ra>
